<compile_context>
chip_gen: v5e
topology: v5e:2x2
jax: 0.10.0
libtpu: 0.0.40
codegen_flags: <defaults>
</compile_context>

<pallas_src>
import math

import jax
import jax.numpy as jnp
from jax.experimental import pallas as pl
from jax.experimental.pallas import tpu as pltpu

D_MODEL = 100

# Rows per grid step (see header). 16384 * 128 lanes * 4 B = 8 MiB / buffer.
DEFAULT_TILE_M = 16384

# Below this many rows, pallas_call launch overhead dominates; let XLA fuse.
_PALLAS_MIN_ROWS = 8192

# If the whole problem fits in one grid step but is at least this large,
# split it into two steps so v7x's two TensorCores both get work.
_MIN_SPLIT_ROWS = 8192


def _round_up(x, m):
    return ((x + m - 1) // m) * m


def _linear_kernel(x_ref, w_ref, b_ref, o_ref):
    # x_ref: (TILE_M, d)  VMEM block of input rows (last block may overhang the
    #                     array; overhang rows are undefined -> only feeds
    #                     output rows the wrapper discards).
    # w_ref: (1, d)       VMEM, torch Linear weight layout (out=1, in=d).
    # b_ref: (1,)         SMEM scalar bias.
    # o_ref: (1, TILE_M)  VMEM lane-dense output row.
    #
    # (1, d) . (TILE_M, d)^T -> (1, TILE_M): contraction on dim 1 of BOTH
    # operands (transposed-rhs form, as in the flash-attention kernels) so the
    # big x tile feeds the MXU directly with no XLU relayout, and the TILE_M
    # axis lands on lanes -> dense unmasked stores.
    row = jax.lax.dot_general(
        w_ref[...], x_ref[...],
        dimension_numbers=(((1,), (1,)), ((), ())),
        preferred_element_type=jnp.float32,
        precision=jax.lax.Precision.HIGHEST,
    )
    o_ref[...] = row + b_ref[0]


def _choose_tile(n, tile_m):
    """Row-tile selection: 128-aligned, >=2 grid steps for medium/large N."""
    tile_m = _round_up(max(int(tile_m), 128), 128)
    if n <= tile_m:
        if n >= _MIN_SPLIT_ROWS:
            # Big enough to be worth splitting across v7x's two TensorCores.
            return _round_up(pl.cdiv(n, 2), 128)
        # Tiny problem: one block, 8-row (sublane) aligned.
        return max(8, _round_up(n, 8))
    return tile_m


def demodel_forward(x, weight, bias, *, tile_m=DEFAULT_TILE_M, use_pallas=None):
    """x: (..., d_model) f32; weight: (1, d_model) (torch layout); bias: (1,).

    Returns squeeze(x @ weight.T + bias), matching the PyTorch module.
    Note: like torch .squeeze(), every size-1 dim (including size-1 batch
    dims) is squeezed away.
    """
    *lead, d = x.shape
    n = int(math.prod(lead)) if lead else 1

    if use_pallas is None:
        use_pallas = n >= _PALLAS_MIN_ROWS

    if not use_pallas:
        y = jnp.einsum("...d,od->...o", x, weight,
                       precision=jax.lax.Precision.HIGHEST) + bias
        return jnp.squeeze(y)

    # Flat (N, d) row slab for the kernel (metadata-only collapse, no copy).
    x2d = x.reshape(n, d)

    tile_m = _choose_tile(n, tile_m)
    n_tiles = pl.cdiv(n, tile_m)

    # VMEM budget: x double-buffered at tile_m x 128 lanes (d=100 pads to 128
    # lanes in VMEM only -- HBM stays at d=100); (1, tile_m) output block pads
    # to 8 sublanes. Keep the explicit limit modest (<= 48 MiB for v7x's
    # 64 MiB per-TC VMEM) but above v5e's 16 MiB default scoped limit.
    x_buf = tile_m * 128 * 4
    o_buf = 8 * tile_m * 4
    vmem_limit = min(48 << 20, max(32 << 20, 2 * (x_buf + o_buf) + (4 << 20)))

    out = pl.pallas_call(
        _linear_kernel,
        out_shape=jax.ShapeDtypeStruct((n_tiles, tile_m), jnp.float32),
        grid=(n_tiles,),
        in_specs=[
            pl.BlockSpec((tile_m, d), lambda i: (i, 0)),          # x row block
            pl.BlockSpec((1, d), lambda i: (0, 0)),               # weight (constant block)
            pl.BlockSpec(memory_space=pltpu.MemorySpace.SMEM),    # bias scalar
        ],
        out_specs=pl.BlockSpec((1, tile_m), lambda i: (i, 0)),
        compiler_params=pltpu.CompilerParams(
            dimension_semantics=("parallel",),
            vmem_limit_bytes=vmem_limit,
        ),
    )(x2d, weight.astype(jnp.float32), bias.astype(jnp.float32))

    flat = out.reshape(n_tiles * tile_m)[:n]
    # Mimic torch .squeeze(): logical Linear output is (*lead, 1).
    return jnp.squeeze(flat.reshape(*lead, 1))


if __name__ == "__main__":
    key = jax.random.PRNGKey(0)
    kx, kw, kb, kx2 = jax.random.split(key, 4)

    batch, seq = 2, 8
    x = jax.random.normal(kx, (batch, seq, D_MODEL), dtype=jnp.float32)

    # nn.Linear(d_model, 1)-style init; torch weight layout (out, in) = (1, d).
    bound = 1.0 / math.sqrt(D_MODEL)
    weight = jax.random.uniform(kw, (1, D_MODEL), jnp.float32, -bound, bound)
    bias = jax.random.uniform(kb, (1,), jnp.float32, -bound, bound)

    # Small shape (forced onto the Pallas path): single exact block.
    y = demodel_forward(x, weight, bias, use_pallas=True)
    jax.block_until_ready(y)
    y_ref = jnp.sum(x * weight[0], axis=-1) + bias[0]
    assert y.shape == (batch, seq), y.shape
    assert jnp.allclose(y, y_ref, atol=1e-4, rtol=1e-4)

    # Larger ragged shape: exercises the multi-tile grid + the un-padded
    # partial-last-block path (no jnp.pad anymore).
    x2 = jax.random.normal(kx2, (4, 300, D_MODEL), dtype=jnp.float32)
    y2 = demodel_forward(x2, weight, bias, tile_m=256, use_pallas=True)
    jax.block_until_ready(y2)
    y2_ref = jnp.sum(x2 * weight[0], axis=-1) + bias[0]
    assert y2.shape == (4, 300), y2.shape
    assert jnp.allclose(y2, y2_ref, atol=1e-4, rtol=1e-4)

    print("KERNEL_OK")
</pallas_src>

<mosaic_0001>
module attributes {stable_mosaic.version = 11 : i64} {
  func.func @_linear_kernel(%arg0: i32, %arg1: memref<16x100xf32, #tpu.memory_space<vmem>>, %arg2: memref<1x100xf32, #tpu.memory_space<vmem>>, %arg3: memref<1xf32, #tpu.memory_space<smem>>, %arg4: memref<1x16xf32, #tpu.memory_space<vmem>>) attributes {dimension_semantics = [#tpu.dimension_semantics<parallel>], iteration_bounds = array<i64: 1>, scalar_prefetch = 0 : i64, scratch_operands = 0 : i64, tpu.core_type = #tpu.core_type<tc>, window_params = [{transform_indices = @transform_0, window_bounds = array<i64: 16, 100>}, {pipeline_mode = #tpu.pipeline_mode<synchronous>, transform_indices = @transform_1, window_bounds = array<i64: 1, 100>}, {transform_indices = @transform_2, window_bounds = array<i64: 1>}, {transform_indices = @transform_3, window_bounds = array<i64: 1, 16>}]} {
    %c0 = arith.constant 0 : index
    %c0_0 = arith.constant 0 : index
    %0 = vector.load %arg2[%c0, %c0_0] : memref<1x100xf32, #tpu.memory_space<vmem>>, vector<1x100xf32>
    %c0_1 = arith.constant 0 : index
    %c0_2 = arith.constant 0 : index
    %1 = vector.load %arg1[%c0_1, %c0_2] : memref<16x100xf32, #tpu.memory_space<vmem>>, vector<16x100xf32>
    %cst = arith.constant dense<0.000000e+00> : vector<1x16xf32>
    %2 = tpu.matmul %0, %1, %cst {dimension_numbers = #tpu.dot_dimension_numbers<[1], [1], [0], [0], [0, 0, 1, 0], [], []>, precision = #tpu.contract_precision<fp32>} : vector<1x100xf32>, vector<16x100xf32>, vector<1x16xf32> -> vector<1x16xf32>
    %c0_3 = arith.constant 0 : index
    %3 = memref.load %arg3[%c0_3] : memref<1xf32, #tpu.memory_space<smem>>
    %4 = vector.broadcast %3 : f32 to vector<1x16xf32>
    %5 = arith.addf %2, %4 : vector<1x16xf32>
    %c0_4 = arith.constant 0 : index
    %c0_5 = arith.constant 0 : index
    %6 = vector.load %arg4[%c0_4, %c0_5] : memref<1x16xf32, #tpu.memory_space<vmem>>, vector<1x16xf32>
    tpu.vector_store %arg4[%c0_4, %c0_5], %5 {strides = array<i32>} : memref<1x16xf32, #tpu.memory_space<vmem>>, vector<1x16xf32>,
    return
  }
  func.func @transform_0(%arg0: i32) -> (i32, i32) {
    %c0_i32 = arith.constant 0 : i32
    %c0_i32_0 = arith.constant 0 : i32
    return %arg0, %c0_i32 : i32, i32
  }
  func.func @transform_1(%arg0: i32) -> (i32, i32) {
    %c0_i32 = arith.constant 0 : i32
    %c0_i32_0 = arith.constant 0 : i32
    %c0_i32_1 = arith.constant 0 : i32
    return %c0_i32, %c0_i32_0 : i32, i32
  }
  func.func @transform_2(%arg0: i32) -> i32 {
    %c0_i32 = arith.constant 0 : i32
    %c0_i32_0 = arith.constant 0 : i32
    return %c0_i32 : i32
  }
  func.func @transform_3(%arg0: i32) -> (i32, i32) {
    %c0_i32 = arith.constant 0 : i32
    %c0_i32_0 = arith.constant 0 : i32
    return %arg0, %c0_i32 : i32, i32
  }
}

</mosaic_0001>

<bundles_post_ra>
// kernel: tpu_custom_call.1
= control target key start
LH: loop header
LB: loop body
LE: loop exit
PB: predicated region body
PF: predicated region fallthrough
CT: control target
= control target key end

     0   :  { %9 = vsyncpa [#allocation4], 0  ;;  %s317_s0 = inlined_call_operand.hbm [shape: f32[16,100], index: 0, kind: input, shape index: {}]   ;;  %s318_s1 = inlined_call_operand.vmem [shape: f32[1,100], index: 1, kind: input, shape index: {}]   ;;  %s319_s2 = inlined_call_operand.<no memory space> [shape: f32[1], index: 2, kind: input, shape index: {}]   ;;  %s320_s3 = inlined_call_operand.hbm [shape: f32[1,16], index: 3, kind: output, shape index: {}]  }
   0x1   :  { %10 = vsyncpa [#allocation5], 0  ;;  %s15_s14 = sshll.u32 %s317_s0, 4  ;;  %s281_s15 = smov [#allocation3]   ;;  %s16_s14 = int_to_ptr.hbm [resolvable:$true] %s15_s14 }
   0x2   :  { %s17_s16 = sshll.u32 %s281_s15, 4  ;;  %s282_s17 = smov 128   ;;  %s18_s16 = int_to_ptr.vmem [resolvable:$true] %s17_s16 }
   0x3   :  { %s283_s18 = smov 8  }
   0x4   :  { %23 = dma.hbm_to_vmem [thread:$0]  %s16_s14, 256, %s18_s16, [#allocation4], %s282_s17, %s282_s17, %s283_s18  }
   0x5   :  { %277 = dma.done.wait [#allocation4], 256  }
   0x6   :  { %278 = vsyncadd [#allocation4], 4294967040  ;;  %vm37_vm0 = vcmask 818176   ;;  %v34_v0 = vld [vmem:[#allocation3 + $0x8] sm:$0xff]  ;;  %v33_v1 = vld [vmem:[#allocation3] sm:$0xff]  ;;  %v36_v21 = vstv %s319_s2  ;;  %s284_s21 = smov [#allocation6]  }
   0x7   :  { %v32_v2 = vld [vmem:[%s318_s1] sm:$0x1]  ;;  %v45_v3 = vsel %vm37_vm0, %v34_v0, 0  ;;  %v42_v4 = vsel %vm37_vm0, %v33_v1, 0  ;;  %s213_s22 = sshll.u32 %s284_s21, 4  ;;  %s215_s25 = sshll.u32 %s320_s3, 4  ;;  %s214_s22 = int_to_ptr.vmem [resolvable:$true] %s213_s22  ;;  %s216_s25 = int_to_ptr.hbm [resolvable:$true] %s215_s25 }
   0x8   :  { %v39_v5 = vsel %vm37_vm0, %v32_v2, 0  ;;  %v61_v6 = vand.u32 4294901760, %v45_v3  ;;  %v63_v7 = vand.u32 4294901760, %v42_v4  ;;  %vm206_vm1 = vcmask 122880  }
   0x9   :  { %v65_v8 = vand.u32 4294901760, %v39_v5 }
   0xa   :  { %v89_v9 = vsub.f32 %v45_v3, %v61_v6  ;;  %62 = vmatpush.xpose.msra.mxu0 %v61_v6  ;;  %146 = vmatpush.xpose.msra.mxu3 %v61_v6  ;;  %v95_v10 = vsub.f32 %v42_v4, %v63_v7 }
   0xb   :  { %v66_v11 = vsub.f32 %v39_v5, %v65_v8 }
   0xc   :  { %121 = vmatpush.xpose.msra.mxu2 %v89_v9  ;;  %v90_v12 = vand.u32 4294901760, %v89_v9  ;;  %v96_v13 = vand.u32 4294901760, %v95_v10 }
   0xd   :  { %v67_v14 = vand.u32 4294901760, %v66_v11 }
   0xe   :  { %v91_v15 = vsub.f32 %v89_v9, %v90_v12  ;;  %64 = vmatpush.xpose.msra.mxu0 %v63_v7  ;;  %148 = vmatpush.xpose.msra.mxu3 %v63_v7  ;;  %v97_v16 = vsub.f32 %v95_v10, %v96_v13 }
   0xf   :  { %v68_v17 = vsub.f32 %v66_v11, %v67_v14 }
  0x10   :  { %v92_v18 = vand.u32 4294901760, %v91_v15  ;;  %124 = vmatpush.xpose.msra.mxu2 %v95_v10  ;;  %v98_v20 = vand.u32 4294901760, %v97_v16 }
  0x11   :  { %v69_v19 = vand.u32 4294901760, %v68_v17  ;;  %152 = vmatmul.f32.vlgmr.msra.gmra.mxu3 %v67_v14 }
  0x12   :  { %173 = vmatpush.xpose.msrb.mxu0 %v90_v12  ;;  %93 = vmatpush.xpose.msra.mxu1 %v92_v18 }
  0x13   :  { %70 = vmatmul.f32.vlgmr.msra.gmra.mxu0 %v69_v19  ;;  %127 = vmatmul.f32.vlgmr.msra.gmra.mxu2 %v66_v11 }
  0x16   :  { %177 = vmatpush.xpose.msrb.mxu0 %v96_v13  ;;  %99 = vmatpush.xpose.msra.mxu1 %v98_v20 }
  0x19   :  { %101 = vmatmul.f32.vlgmr.msra.gmra.mxu1 %v65_v8 }
  0x1a   :  { %198 = vmatpush.xpose.msrb.mxu1 %v61_v6 }
  0x1b   :  { %179 = vmatmul.f32.vlgmr.msrb.gmra.mxu0 %v65_v8 }
  0x1e   :  { %200 = vmatpush.xpose.msrb.mxu1 %v63_v7 }
  0x21   :  { %202 = vmatmul.f32.vlgmr.msrb.gmra.mxu1 %v65_v8 }
  0x90   :  { %v71_v22 = vpop.f32.mrf.mxu0 }
  0x91   :  { %v72_v23 = vadd.f32 %v71_v22, %v36_v21 }
  0x94   :  { %v153_v27 = vpop.f32.mrf.mxu3 }
  0x96   :  { %v102_v24 = vpop.f32.mrf.mxu1  ;;  %v128_v25 = vpop.f32.mrf.mxu2 }
  0x97   :  { %v103_v26 = vadd.f32 %v102_v24, %v72_v23 }
  0x98   :  { %v180_v29 = vpop.f32.mrf.mxu0 }
  0x99   :  { %v129_v28 = vadd.f32 %v128_v25, %v103_v26 }
  0x9b   :  { %v154_v30 = vadd.f32 %v153_v27, %v129_v28 }
  0x9d   :  { %v181_v31 = vadd.f32 %v180_v29, %v154_v30 }
  0x9e   :  { %v203_v32 = vpop.f32.mrf.mxu1 }
  0x9f   :  { %v204_v33 = vadd.f32 %v203_v32, %v181_v31 }
  0xa1   :  { %207 = vst.msk [vmem:[#allocation6] sm:$0x1] %vm206_vm1, %v204_v33 }
  0xa2   :  { %218 = dma.vmem_to_hbm [thread:$0]  %s214_s22, 16, %s216_s25, [#allocation5]  }
  0xa3   :  { %279 = dma.done.wait [#allocation5], 16  }
  0xa4   :  { %280 = vsyncadd [#allocation5], 4294967280 }
  0xa5   :  { %223 = vsyncpa [#allocation4], 1 }
  0xa6   :  { %224 = vsyncpa [#allocation5], 1 }

</bundles_post_ra>
